<compile_context>
chip_gen: v7x
topology: tpu7x:2x2x1
jax: 0.10.0
libtpu: 0.0.40
codegen_flags: <defaults>
</compile_context>

<pallas_src>
import jax
import jax.numpy as jnp
from jax.experimental import pallas as pl
from jax.experimental.pallas import tpu as pltpu


def _kv_scale_kernel(alpha_ref, k_ref, k_out_ref):
    # alpha_ref: (H,) in SMEM, already in K's dtype.
    # k_ref / k_out_ref: (TS, LANES) tile of head (program_id(0) % H).
    h = pl.program_id(0) % alpha_ref.shape[0]
    k_out_ref[...] = (k_ref[...] * alpha_ref[h]).astype(k_out_ref.dtype)


def _pick_row_tile(n_rows, bytes_per_row, target_bytes=1 << 20):
    """Largest row tile <= ~target_bytes that is a multiple of 8 and divides
    n_rows evenly (or the full n_rows, which is always legal)."""
    target_rows = max(8, target_bytes // max(1, bytes_per_row))
    if n_rows <= target_rows:
        return n_rows
    ts = (target_rows // 8) * 8
    while ts >= 8:
        if n_rows % ts == 0:
            return ts
        ts -= 8
    return n_rows


def kv_shifting_attention(alpha1, key_states, value_states):
    """alpha1: (H,) ; key_states, value_states: (B, H, S, D)."""
    B, H, S, D = key_states.shape
    assert alpha1.shape == (H,)

    # Lane-dense layout: fold (S, D) of each head into rows of 128 lanes when
    # possible (avoids masked vst.msk stores for D < 128). Falls back to (S, D).
    LANES = 128
    if (S * D) % LANES == 0:
        n_rows, lanes = (S * D) // LANES, LANES
    else:
        n_rows, lanes = S, D  # still correct, just not lane-dense

    k2 = key_states.reshape(B * H, n_rows, lanes)
    alpha = alpha1.astype(key_states.dtype)

    bytes_per_row = lanes * jnp.dtype(key_states.dtype).itemsize
    ts = _pick_row_tile(n_rows, bytes_per_row)

    k_spec = pl.BlockSpec((None, ts, lanes), lambda i, s: (i, s, 0))

    k_scaled = pl.pallas_call(
        _kv_scale_kernel,
        out_shape=jax.ShapeDtypeStruct(k2.shape, k2.dtype),
        grid=(B * H, n_rows // ts),
        in_specs=[
            pl.BlockSpec(memory_space=pltpu.MemorySpace.SMEM),  # alpha, whole array
            k_spec,                                             # key_states tiles
        ],
        out_specs=k_spec,
        input_output_aliases={1: 0},  # write scaled K in place (no 2nd HBM buffer)
        compiler_params=pltpu.CompilerParams(
            dimension_semantics=("parallel", "parallel")
        ),
    )(alpha, k2)

    # value_states is a pure pass-through in the PyTorch forward.
    # TODO(synk): the _shift_gate / beta1 path after the early `return` in the
    # PyTorch module is dead code and intentionally not implemented.
    return k_scaled.reshape(B, H, S, D), value_states


if __name__ == "__main__":
    # Small, deterministic shapes consistent with the module:
    # batch=2, num_key_value_heads=4, seq_len=8, head_dim=32
    B, H, S, D = 2, 4, 8, 32
    key = jax.random.PRNGKey(0)
    k_alpha, k_k, k_v = jax.random.split(key, 3)

    # nn.Parameter(torch.rand(num_key_value_heads)) -> uniform [0, 1)
    alpha1 = jax.random.uniform(k_alpha, (H,), dtype=jnp.float32)
    key_states = jax.random.normal(k_k, (B, H, S, D), dtype=jnp.float32)
    value_states = jax.random.normal(k_v, (B, H, S, D), dtype=jnp.float32)

    # Reference computed BEFORE running the kernel (kernel aliases its K input).
    k_expected = alpha1.reshape(1, H, 1, 1) * key_states
    v_expected = value_states

    k_out, v_out = kv_shifting_attention(alpha1, key_states, value_states)
    jax.block_until_ready((k_out, v_out))

    assert jnp.allclose(k_out, k_expected, atol=1e-6), "key_states mismatch"
    assert jnp.array_equal(v_out, v_expected), "value_states mismatch"

    print("KERNEL_OK")
</pallas_src>

<mosaic_0001>
module attributes {stable_mosaic.version = 11 : i64} {
  func.func @_kv_scale_kernel(%arg0: i32, %arg1: i32, %arg2: memref<4xf32, #tpu.memory_space<smem>>, %arg3: memref<1x2x128xf32, #tpu.memory_space<vmem>>, %arg4: memref<1x2x128xf32, #tpu.memory_space<vmem>>) attributes {dimension_semantics = [#tpu.dimension_semantics<parallel>, #tpu.dimension_semantics<parallel>], iteration_bounds = array<i64: 8, 1>, scalar_prefetch = 0 : i64, scratch_operands = 0 : i64, tpu.core_type = #tpu.core_type<tc>, window_params = [{transform_indices = @transform_0, window_bounds = array<i64: 4>}, {transform_indices = @transform_1, window_bounds = array<i64: 1, 2, 128>}, {transform_indices = @transform_2, window_bounds = array<i64: 1, 2, 128>}]} {
    %c4_i32 = arith.constant 4 : i32
    %c0_i32 = arith.constant 0 : i32
    %0 = arith.cmpi eq, %c4_i32, %c0_i32 : i32
    %c1_i32 = arith.constant 1 : i32
    %1 = arith.select %0, %c1_i32, %c4_i32 : i32
    %2 = arith.remsi %arg0, %1 : i32
    %c0_i32_0 = arith.constant 0 : i32
    %3 = arith.cmpi ne, %2, %c0_i32_0 : i32
    %c0_i32_1 = arith.constant 0 : i32
    %4 = arith.cmpi slt, %2, %c0_i32_1 : i32
    %c0_i32_2 = arith.constant 0 : i32
    %5 = arith.cmpi slt, %1, %c0_i32_2 : i32
    %6 = arith.xori %4, %5 : i1
    %7 = arith.andi %6, %3 : i1
    %8 = arith.addi %2, %1 : i32
    %9 = arith.select %7, %8, %2 : i32
    %c0 = arith.constant 0 : index
    %c0_3 = arith.constant 0 : index
    %c0_4 = arith.constant 0 : index
    %10 = vector.load %arg3[%c0, %c0_3, %c0_4] : memref<1x2x128xf32, #tpu.memory_space<vmem>>, vector<1x2x128xf32>
    %11 = vector.shape_cast %10 : vector<1x2x128xf32> to vector<2x128xf32>
    %12 = arith.index_cast %9 : i32 to index
    %13 = memref.load %arg2[%12] : memref<4xf32, #tpu.memory_space<smem>>
    %14 = vector.broadcast %13 : f32 to vector<2x128xf32>
    %15 = arith.mulf %11, %14 : vector<2x128xf32>
    %c0_5 = arith.constant 0 : index
    %c0_6 = arith.constant 0 : index
    %c0_7 = arith.constant 0 : index
    %16 = vector.load %arg4[%c0_5, %c0_6, %c0_7] : memref<1x2x128xf32, #tpu.memory_space<vmem>>, vector<1x2x128xf32>
    %17 = vector.shape_cast %16 : vector<1x2x128xf32> to vector<2x128xf32>
    %18 = vector.shape_cast %15 : vector<2x128xf32> to vector<1x2x128xf32>
    tpu.vector_store %arg4[%c0_5, %c0_6, %c0_7], %18 {strides = array<i32>} : memref<1x2x128xf32, #tpu.memory_space<vmem>>, vector<1x2x128xf32>,
    return
  }
  func.func @transform_0(%arg0: i32, %arg1: i32) -> i32 {
    %c0_i32 = arith.constant 0 : i32
    %c0_i32_0 = arith.constant 0 : i32
    return %c0_i32 : i32
  }
  func.func @transform_1(%arg0: i32, %arg1: i32) -> (i32, i32, i32) {
    %c0_i32 = arith.constant 0 : i32
    %c0_i32_0 = arith.constant 0 : i32
    return %arg0, %arg1, %c0_i32 : i32, i32, i32
  }
  func.func @transform_2(%arg0: i32, %arg1: i32) -> (i32, i32, i32) {
    %c0_i32 = arith.constant 0 : i32
    %c0_i32_0 = arith.constant 0 : i32
    return %arg0, %arg1, %c0_i32 : i32, i32, i32
  }
}

</mosaic_0001>

<bundles_post_ra>
// kernel: tpu_custom_call.1
= control target key start
LH: loop header
LB: loop body
LE: loop exit
PB: predicated region body
PF: predicated region fallthrough
CT: control target
= control target key end

     0   :  { %7 = vsyncpa [#allocation5], 0  ;;  %s756_s0 = inlined_call_operand.vmem [shape: f32[4], index: 0, kind: input, shape index: {}]   ;;  %s757_s1 = inlined_call_operand.hbm [shape: f32[8,2,128], index: 1, kind: input, shape index: {}, may-alias: {1,2}]   ;;  %s758_s2 = inlined_call_operand.hbm [shape: f32[8,2,128], index: 2, kind: output, shape index: {}, may-alias: {1,2}]  }
   0x1   :  { %8 = vsyncpa [#allocation3], 0 }
   0x2   :  { %10 = vsyncpa [#allocation3 + $0x1], 0 }
   0x3   :  { %11 = vsyncpa [#allocation4], 0 }
   0x4   :  { %13 = vsyncpa [#allocation4 + $0x1], 0  ;;  %s556_s9 = smov 0   ;;  %s558_s10 = smov 0  }
   0x5   :  { %s560_s11 = smov 0   ;;  %s562_s12 = smov 0  }
   0x6   :  { %s564_s13 = smov 0   ;;  %s566_s14 = smov 0  }
   0x7 LB: > { %s314_s15 = sadd.s32 4294967295, %s536_s14   ;;  %s315_s16 = sadd.s32 4294967294, %s536_s14   ;;  %s536_s14 = sphi %s566_s14, %s19_s14   ;;  %s532_s13 = sphi %s564_s13, %s779_s13   ;;  %s528_s12 = sphi %s562_s12, %s778_s12   ;;  %s524_s11 = sphi %s560_s11, %s777_s11   ;;  %s520_s10 = sphi %s558_s10, %s776_s10   ;;  %s516_s9 = sphi %s556_s9, %s775_s9  }
   0x8   : > { %p74_p0 = scmp.ne.s32.totalorder %s520_s10, %s516_s9  ;;  %p590_p1 = scmp.eq.s32.totalorder %s314_s15, 0 }
   0x9   : > { %p594_p2 = scmp.eq.s32.totalorder %s314_s15, 7  ;;  %p106_p3 = scmp.eq.s32.totalorder %s315_s16, 7 }
   0xa   : > { %s763_s17 = scalar_select %p590_p1, 1, 0 }
   0xb   : > { %p600_p4 = por %p590_p1, %p74_p0  ;;  %p316_p5 = scmp.ge.s32.totalorder %s536_s14, 1 }
   0xc   : > { %p605_p6 = por %p106_p3, %p74_p0  ;;  %p113_p7 = scmp.lt.s32.totalorder %s536_s14, 9 }
   0xd   : > { %s765_s19 = scalar_select %p600_p4, 1, 0 }
   0xe   : > { %s766_s20 = scalar_select %p605_p6, 1, 0 }
   0xf   : > { %s126_s23 = sshll.u32 %s756_s0, 4  ;;  %p613_p8 = pnand %p316_p5, %p113_p7  ;;  %s127_s23 = int_to_ptr.vmem [resolvable:$true] %s126_s23 }
  0x10   : > { %s31_s26 = sadd.s32 1, %s532_s13  ;;  %s61_s27 = sadd.s32 1, %s524_s11 }
  0x11   : > { %p340_p9 = pneg %p613_p8  ;;  %p33_p11 = scmp.ge.s32.totalorder %s31_s26, 8 }
  0x12   : > { %s405_s28 = scalar_lea.vmem %s127_s23, 16  ;;  %p413_p5 = scmp.lt.s32.totalorder %s127_s23, %s127_s23 }
  0x13   : > { %p621_p10 = pnand %p340_p9, %p590_p1  ;;  %p406_p12 = scmp.ne.s32.totalorder %s127_s23, %s405_s28 }
  0x14   : > { %p414_p7 = scmp.lt.s32.totalorder %s405_s28, %s405_s28 }
  0x15   : > { %p407_p13 = pneg %p621_p10 }
  0x16   : > { %p415_p6 = por %p414_p7, %p413_p5 }
  0x17   : > { %p408_p0 = pnand %p407_p13, %p406_p12 }
  0x19   : > { %p409_p3 = pneg %p408_p0 }
  0x1b   : > { %p416_p4 = pnand %p415_p6, %p409_p3 }
  0x1d   : > { %419 = shalt.err (!%p416_p4)
}
  0x1e   : > { %s538_s29 = smov [#allocation2]   ;;  %s781_s26 = smov (%p33_p11, %s31_s26), 0 }
  0x1f   : > { %343 = dma.vmem_to_smem (!%p621_p10), %s127_s23, 16, %s538_s29, [#allocation5]  }
  0x20   : > { %p68_p9 = scmp.ne.s32.totalorder %s524_s11, %s520_s10  ;;  %p69_p12 = scmp.eq.s32.totalorder %s536_s14, 0 }
  0x21   : > { %s56_s30 = ssub.s32 %s532_s13, %s781_s26  ;;  %p353_p4 = scmp.lt.s32.totalorder %s536_s14, 8 }
  0x22   : > { %p59_p6 = scmp.eq.s32.totalorder %s56_s30, 0  ;;  %p70_p13 = por %p69_p12, %p68_p9 }
  0x23   : > { %p641_p0 = por %p594_p2, %p68_p9  ;;  %s137_s4 = sand.u32 1, %s524_s11  }
  0x24   : > { %s647_s5 = scalar_select %p59_p6, %s524_s11, %s61_s27  }
  0x25   : > { %s769_s3 = scalar_select %p641_p0, 1, 0 }
  0x26   : > { %s319_s6 = sshll.u32 %s137_s4, 1  ;;  %s320_s7 = sshll.u32 %s532_s13, 5 }
  0x27   : > { %s653_s16 = scalar_lea.hbm %s757_s1, %s320_s7  ;;  %s141_s21 = scalar_lea.vmem [#allocation6], %s319_s6 }
  0x28   : > { %s149_s18 = sshll.u32 %s141_s21, 4  ;;  %p657_p2 = pnand %p353_p4, %p70_p13  ;;  %s655_s18 = int_to_ptr.vmem [resolvable:$true] %s149_s18 }
  0x29   : > { %s138_s23 = scalar_lea.sflag [#allocation3], %s137_s4  ;;  %s420_s25 = scalar_lea.hbm %s653_s16, 32 }
  0x2a   : > { %p421_p10 = scmp.ne.s32.totalorder %s653_s16, %s420_s25  ;;  %p422_p11 = pneg %p657_p2 }
  0x2b   : > { %s425_s29 = scalar_lea.hbm %s757_s1, 256  ;;  %p426_p7 = scmp.lt.u32.totalorder %s653_s16, %s757_s1 }
  0x2c   : > { %p423_p3 = pnand %p422_p11, %p421_p10  ;;  %p427_p9 = scmp.lt.u32.totalorder %s425_s29, %s420_s25 }
  0x2d   : > { %p429_p4 = scmp.lt.u32.totalorder %s420_s25, %s653_s16 }
  0x2e   : > { %p424_p5 = pneg %p423_p3  ;;  %p428_p12 = por %p427_p9, %p426_p7 }
  0x30   : > { %p430_p6 = por %p429_p4, %p428_p12 }
  0x32   : > { %p431_p13 = pnand %p430_p6, %p424_p5 }
  0x34   : > { %434 = shalt.err (!%p431_p13)
}
  0x35   : > { %s435_s4 = scalar_lea.vmem %s655_s18, 32  ;;  %s539_s7 = smov [#allocation6]  }
  0x36   : > { %p436_p10 = scmp.ne.s32.totalorder %s655_s18, %s435_s4  ;;  %s440_s8 = sshll.u32 %s539_s7, 4  ;;  %s441_s8 = int_to_ptr.vmem [resolvable:$false] %s440_s8 }
  0x37   : > { %s442_s15 = scalar_lea.vmem %s441_s8, 64  ;;  %p443_p1 = scmp.lt.s32.totalorder %s655_s18, %s441_s8 }
  0x38   : > { %p438_p3 = pnand %p436_p10, %p422_p11  ;;  %p444_p7 = scmp.lt.s32.totalorder %s442_s15, %s435_s4 }
  0x3a   : > { %p439_p0 = pneg %p438_p3  ;;  %p445_p9 = por %p444_p7, %p443_p1 }
  0x3c   : > { %p446_p12 = pnand %p445_p9, %p439_p0 }
  0x3e   : > { %449 = shalt.err (!%p446_p12)
}
  0x3f   : > { %347 = dma.hbm_to_vmem [thread:$0]  (!%p657_p2), %s653_s16, 32, %s655_s18, %s138_s23  }
  0x40   : > { %158 = sbr.rel (%p613_p8) target bundleno = 109 (0x6d), region = 28  ;;  %p771_p11 = scmp.ne.s32.totalorder (!%p613_p8), %s763_s17, 0 }
  0x47   : > { %503 = dma.done.wait (%p771_p11), [#allocation5], 16  }
  0x48   : > { %505 = vsyncadd (%p771_p11), [#allocation5], 4294967280  ;;  %s693_s21 = sand.u32 1, %s520_s10   ;;  %p772_p1 = scmp.ne.s32.totalorder %s765_s19, 0 }
  0x49   : > { %s323_s25 = sshll.u32 %s693_s21, 1  ;;  %s165_s22 = scalar_lea.sflag [#allocation3], %s693_s21 }
  0x4a   : > { %s168_s27 = scalar_lea.vmem [#allocation6], %s323_s25 }
  0x4b   : > { %507 = dma.done.wait (%p772_p1), %s165_s22, 32  }
  0x4c   : > { %509 = vsyncadd (%p772_p1), %s165_s22, 4294967264 }
  0x4d   : > { %173 = sfence }
  0x4e   : > { %p190_p8 = scmp.lt.s32.totalorder %s528_s12, 0  ;;  %s191_s17 = ssub.s32 0, %s528_s12  ;;  %v202_v0 = vld [vmem:[%s168_s27] sm:$0x3] }
  0x4f   : > { %s325_s24 = smin.u32 %s528_s12, %s191_s17  ;;  %s189_s29 = scalar_lea.vmem [#allocation7], %s323_s25 }
  0x50   : > { %s193_s16 = sand.u32 3, %s325_s24   ;;  %s222_s19 = sshll.u32 %s189_s29, 4  ;;  %s705_s19 = int_to_ptr.vmem [resolvable:$true] %s222_s19 }
  0x51   : > { %s194_s18 = ssub.s32 0, %s193_s16  ;;  %s329_s30 = sshll.u32 %s528_s12, 5 }
  0x52   : > { %s783_s18 = smov (!%p190_p8, %s194_s18), %s193_s16  ;;  %s710_s7 = scalar_lea.hbm %s758_s2, %s329_s30 }
  0x53   : > { %p327_p0 = scmp.lt.s32.totalorder %s783_s18, 0  ;;  %s200_s23 = sadd.s32 4, %s783_s18 }
  0x54   : > { %s208_s8 = scalar_lea.sflag [#allocation4], %s693_s21  ;;  %s450_s15 = scalar_lea.vmem %s705_s19, 32 }
  0x55   : > { %s785_s23 = smov (!%p327_p0, %s200_s23), %s783_s18  ;;  %p451_p2 = scmp.ne.s32.totalorder %s705_s19, %s450_s15 }
  0x56   : > { %s203_s28 = sld [smem:[#allocation2 + %s785_s23]]  ;;  %p773_p5 = scmp.ne.s32.totalorder %s769_s3, 0 }
  0x57   : > { %s540_s12 = smov [#allocation7]  }
  0x58   : > { %p452_p4 = pnand %p451_p2, %p773_p5  ;;  %s454_s25 = sshll.u32 %s540_s12, 4  ;;  %s455_s25 = int_to_ptr.vmem [resolvable:$false] %s454_s25 }
  0x59   : > { %s456_s22 = scalar_lea.vmem %s455_s25, 64  ;;  %p457_p13 = scmp.lt.s32.totalorder %s705_s19, %s455_s25 }
  0x5a   : > { %p453_p6 = pneg %p452_p4  ;;  %p458_p10 = scmp.lt.s32.totalorder %s456_s22, %s450_s15 }
  0x5c   : > { %v204_v1 = vstv %s203_s28  ;;  %p459_p3 = por %p458_p10, %p457_p13 }
  0x5d   : > { %v205_v2 = vmul.f32 %v204_v1, %v202_v0 }
  0x5e   : > { %p460_p7 = pnand %p459_p3, %p453_p6 }
  0x5f   : > { %206 = vst [vmem:[%s189_s29] sm:$0x3] %v205_v2 }
  0x60   : > { %463 = shalt.err (!%p460_p7)
}
  0x61   : > { %s464_s21 = scalar_lea.hbm %s710_s7, 32  ;;  %s468_s24 = scalar_lea.hbm %s758_s2, 256 }
  0x62   : > { %p465_p9 = scmp.ne.s32.totalorder %s710_s7, %s464_s21  ;;  %p469_p1 = scmp.lt.u32.totalorder %s710_s7, %s758_s2 }
  0x63   : > { %p470_p8 = scmp.lt.u32.totalorder %s468_s24, %s464_s21  ;;  %p472_p2 = scmp.lt.u32.totalorder %s464_s21, %s710_s7 }
  0x64   : > { %p466_p12 = pnand %p465_p9, %p773_p5 }
  0x65   : > { %p471_p0 = por %p470_p8, %p469_p1 }
  0x66   : > { %p467_p11 = pneg %p466_p12 }
  0x67   : > { %p473_p4 = por %p472_p2, %p471_p0 }
  0x69   : > { %p474_p6 = pnand %p473_p4, %p467_p11 }
  0x6b   : > { %477 = shalt.err (!%p474_p6)
}
  0x6c   : > { %338 = dma.vmem_to_hbm [thread:$0]  (%p773_p5), %s705_s19, 32, %s710_s7, %s208_s8  }
  0x6d PF: > { %p355_p13 = scmp.ge.s32.totalorder %s536_s14, 2  ;;  %s234_s23 = sand.u32 1, %s516_s9  }
  0x6e   : > { %p774_p10 = scmp.ne.s32.totalorder %s766_s20, 0  ;;  %s235_s28 = scalar_lea.sflag [#allocation4], %s234_s23 }
  0x70   : > { %p349_p3 = pnand %p355_p13, %p774_p10 }
  0x72   : > { %511 = dma.done.wait (!%p349_p3), %s235_s28, 32  }
  0x73   : > { %513 = vsyncadd (!%p349_p3), %s235_s28, 4294967264  ;;  %s19_s14 = sadd.s32 1, %s536_s14   ;;  %s775_s9 = smov %s520_s10 }
  0x74   : > { %p16_p7 = scmp.ge.s32.totalorder %s19_s14, 10   ;;  %s776_s10 = smov %s524_s11 }
  0x75   : > { %s777_s11 = smov %s647_s5  ;;  %s778_s12 = smov %s532_s13 }
  0x76   : > { %s779_s13 = smov %s781_s26  ;;  %18 = sbr.rel (!%p16_p7) target bundleno = 7 (0x7), region = 78 }
  0x7d   :  { %240 = vsyncpa [#allocation3], 1 }
  0x7e   :  { %242 = vsyncpa [#allocation3 + $0x1], 1 }
  0x7f   :  { %243 = vsyncpa [#allocation4], 1 }
  0x80   :  { %245 = vsyncpa [#allocation4 + $0x1], 1 }
  0x81   :  { %246 = vsyncpa [#allocation5], 1 }
  0x82   :  { %248 = vsyncpa [#allocation5 + $0x1], 1 }

</bundles_post_ra>
